<compile_context>
chip_gen: v5e
topology: v5e:2x2
jax: 0.10.0
libtpu: 0.0.40
codegen_flags: <defaults>
</compile_context>

<pallas_src>
import jax
import jax.numpy as jnp
from jax.experimental import pallas as pl
from jax.experimental.pallas import tpu as pltpu


_BLOCK_BUDGET_BYTES = 2 * 1024 * 1024  # per-block cap; x2 dbl-buffer x (in+out) ~ 8 MiB VMEM


def _modal_amp_kernel(w_ref, x_ref, o_ref):
    # w_ref: (m_blk, 1) per-mode scale; x_ref / o_ref: (m_blk, t_blk) channel-1
    # tile (batch / channel dims squeezed).  Broadcast along the step axis.
    o_ref[...] = x_ref[...] * w_ref[...]


def _choose_blocks(num_modes: int, num_steps: int, itemsize: int):
    """Largest (mode, step) block under the VMEM budget; 8-aligned when tiling."""
    row_bytes = max(1, num_steps * itemsize)
    max_rows = _BLOCK_BUDGET_BYTES // row_bytes
    if max_rows >= num_modes:
        return num_modes, num_steps          # full (M, T) slab fits: one block
    if max_rows >= 8:
        return (max_rows // 8) * 8, num_steps  # tile modes; sublane block 8-aligned
    # A single mode row exceeds the budget (very long num_steps): tile steps too.
    m_blk = 8 if num_modes >= 8 else num_modes
    if num_steps % 128 == 0:
        max_lanes = _BLOCK_BUDGET_BYTES // max(1, m_blk * itemsize)
        t_blk = max(128, (max_lanes // 128) * 128)
        t_blk = min(num_steps, t_blk)
    else:
        t_blk = num_steps                    # full-extent tail is always legal
    return m_blk, t_blk


def modal_amp_forward(weight: jax.Array, params: jax.Array):
    """weight: (M,), params: (B, 3, M, T) -> (out, None); out dtype == params dtype."""
    assert params.ndim == 4
    B, P, M, T = params.shape
    assert P == 3
    assert weight.shape == (M,)

    dt = params.dtype
    itemsize = jnp.dtype(dt).itemsize
    # Only the tiny (M,) weight is cast; params stays in its native dtype.
    w2d = weight.astype(dt).reshape(M, 1)

    m_blk, t_blk = _choose_blocks(M, T, itemsize)
    n_m = pl.cdiv(M, m_blk)
    n_t = pl.cdiv(T, t_blk)

    cost = pl.CostEstimate(
        flops=B * M * T,                               # one mul per channel-1 elem
        transcendentals=0,
        bytes_accessed=(2 * B * M * T + M) * itemsize,  # read+write ch-1 + weight
    )

    out = pl.pallas_call(
        _modal_amp_kernel,
        out_shape=jax.ShapeDtypeStruct((B, P, M, T), dt),
        grid=(B, n_m, n_t),
        in_specs=[
            # per-mode scale column, broadcast along steps inside the kernel
            pl.BlockSpec((m_blk, 1), lambda b, m, t: (m, 0)),
            # channel-1 slab only: channel block index pinned to 1
            pl.BlockSpec(
                (pl.Squeezed(), pl.Squeezed(), m_blk, t_blk),
                lambda b, m, t: (b, 1, m, t),
            ),
        ],
        out_specs=pl.BlockSpec(
            (pl.Squeezed(), pl.Squeezed(), m_blk, t_blk),
            lambda b, m, t: (b, 1, m, t),
        ),
        # P8: alias params (input index 1) to the output -- channels 0/2 are
        # never DMA'd and keep their values; only channel-1 blocks are rewritten.
        input_output_aliases={1: 0},
        cost_estimate=cost,
        compiler_params=pltpu.CompilerParams(
            dimension_semantics=("parallel", "parallel", "parallel"),
        ),
    )(w2d, params)

    return out, None


if __name__ == "__main__":
    key = jax.random.PRNGKey(0)
    k_w, k_x = jax.random.split(key)

    B, M, T = 2, 8, 16
    # Deterministic "learnable" per-mode amplitudes (uniform, like torch.rand)
    weight = jax.random.uniform(k_w, (M,), dtype=jnp.float32)
    # Input modal parameters: (batch, 3, num_modes, num_steps)
    params = jax.random.normal(k_x, (B, 3, M, T), dtype=jnp.float32)

    # Reference computed BEFORE the kernel call: params is donated to the
    # kernel (its buffer is invalidated afterwards).
    ref = params.at[:, 1, :, :].multiply(weight[None, :, None])
    ref = jax.block_until_ready(ref)

    fwd = jax.jit(modal_amp_forward, donate_argnums=(1,))
    out, aux = fwd(weight, params)
    out = jax.block_until_ready(out)

    assert aux is None
    assert out.shape == (B, 3, M, T)
    assert out.dtype == ref.dtype
    assert jnp.allclose(out, ref, atol=1e-6, rtol=1e-6)

    print("KERNEL_OK")
</pallas_src>

<mosaic_0001>
module attributes {stable_mosaic.version = 11 : i64} {
  func.func @_modal_amp_kernel(%arg0: i32, %arg1: i32, %arg2: i32, %arg3: memref<8x1xf32, #tpu.memory_space<vmem>>, %arg4: memref<1x1x8x16xf32, #tpu.memory_space<vmem>>, %arg5: memref<1x1x8x16xf32, #tpu.memory_space<vmem>>) attributes {dimension_semantics = [#tpu.dimension_semantics<parallel>, #tpu.dimension_semantics<parallel>, #tpu.dimension_semantics<parallel>], iteration_bounds = array<i64: 2, 1, 1>, scalar_prefetch = 0 : i64, scratch_operands = 0 : i64, tpu.core_type = #tpu.core_type<tc>, window_params = [{transform_indices = @transform_0, window_bounds = array<i64: 8, 1>}, {transform_indices = @transform_1, window_bounds = array<i64: 1, 1, 8, 16>}, {transform_indices = @transform_2, window_bounds = array<i64: 1, 1, 8, 16>}]} {
    %c0 = arith.constant 0 : index
    %c0_0 = arith.constant 0 : index
    %c0_1 = arith.constant 0 : index
    %c0_2 = arith.constant 0 : index
    %0 = vector.load %arg4[%c0, %c0_0, %c0_1, %c0_2] : memref<1x1x8x16xf32, #tpu.memory_space<vmem>>, vector<1x1x8x16xf32>
    %1 = vector.shape_cast %0 : vector<1x1x8x16xf32> to vector<8x16xf32>
    %c0_3 = arith.constant 0 : index
    %c0_4 = arith.constant 0 : index
    %2 = vector.load %arg3[%c0_3, %c0_4] : memref<8x1xf32, #tpu.memory_space<vmem>>, vector<8x1xf32>
    %3 = vector.broadcast %2 : vector<8x1xf32> to vector<8x16xf32>
    %4 = arith.mulf %1, %3 : vector<8x16xf32>
    %c0_5 = arith.constant 0 : index
    %c0_6 = arith.constant 0 : index
    %c0_7 = arith.constant 0 : index
    %c0_8 = arith.constant 0 : index
    %5 = vector.load %arg5[%c0_5, %c0_6, %c0_7, %c0_8] : memref<1x1x8x16xf32, #tpu.memory_space<vmem>>, vector<1x1x8x16xf32>
    %6 = vector.shape_cast %5 : vector<1x1x8x16xf32> to vector<8x16xf32>
    %7 = vector.shape_cast %4 : vector<8x16xf32> to vector<1x1x8x16xf32>
    tpu.vector_store %arg5[%c0_5, %c0_6, %c0_7, %c0_8], %7 {strides = array<i32>} : memref<1x1x8x16xf32, #tpu.memory_space<vmem>>, vector<1x1x8x16xf32>,
    return
  }
  func.func @transform_0(%arg0: i32, %arg1: i32, %arg2: i32) -> (i32, i32) {
    %c0_i32 = arith.constant 0 : i32
    %c0_i32_0 = arith.constant 0 : i32
    return %arg1, %c0_i32 : i32, i32
  }
  func.func @transform_1(%arg0: i32, %arg1: i32, %arg2: i32) -> (i32, i32, i32, i32) {
    %c1_i32 = arith.constant 1 : i32
    %c0_i32 = arith.constant 0 : i32
    return %arg0, %c1_i32, %arg1, %arg2 : i32, i32, i32, i32
  }
  func.func @transform_2(%arg0: i32, %arg1: i32, %arg2: i32) -> (i32, i32, i32, i32) {
    %c1_i32 = arith.constant 1 : i32
    %c0_i32 = arith.constant 0 : i32
    return %arg0, %c1_i32, %arg1, %arg2 : i32, i32, i32, i32
  }
}

</mosaic_0001>

<bundles_post_ra>
// kernel: modal_amp_forward.1
= control target key start
LH: loop header
LB: loop body
LE: loop exit
PB: predicated region body
PF: predicated region fallthrough
CT: control target
= control target key end

     0   :  { %7 = vsyncpa [#allocation3], 0  ;;  %s674_s0 = inlined_call_operand.vmem [shape: f32[8,1], index: 0, kind: input, shape index: {}]   ;;  %s675_s1 = inlined_call_operand.hbm [shape: f32[2,3,8,16], index: 1, kind: input, shape index: {}, may-alias: {1,2}]   ;;  %s676_s2 = inlined_call_operand.hbm [shape: f32[2,3,8,16], index: 2, kind: output, shape index: {}, may-alias: {1,2}]  }
   0x1   :  { %9 = vsyncpa [#allocation3 + $0x1], 0 }
   0x2   :  { %10 = vsyncpa [#allocation4], 0 }
   0x3   :  { %12 = vsyncpa [#allocation4 + $0x1], 0  ;;  %s551_s9 = smov 0   ;;  %s553_s10 = smov 0  }
   0x4   :  { %s555_s11 = smov 0   ;;  %s557_s12 = smov 0  }
   0x5   :  { %s559_s13 = smov 0   ;;  %s561_s14 = smov 0  }
   0x6 LB: > { %s343_s15 = sadd.s32 4294967295, %s533_s14   ;;  %s344_s16 = sadd.s32 4294967294, %s533_s14   ;;  %s533_s14 = sphi %s561_s14, %s18_s14   ;;  %s529_s13 = sphi %s559_s13, %s685_s13   ;;  %s525_s12 = sphi %s557_s12, %s684_s12   ;;  %s521_s11 = sphi %s555_s11, %s683_s11   ;;  %s517_s10 = sphi %s553_s10, %s682_s10   ;;  %s513_s9 = sphi %s551_s9, %s681_s9  }
   0x7   : > { %s37_s17 = sadd.s32 1, %s529_s13  ;;  %s74_s18 = sadd.s32 1, %s521_s11 }
   0x8   : > { %p39_p0 = scmp.ge.s32.totalorder %s37_s17, 2  ;;  %p81_p1 = scmp.ne.s32.totalorder %s521_s11, %s517_s10 }
   0x9   : > { %p82_p2 = scmp.eq.s32.totalorder %s533_s14, 0  ;;  %p87_p3 = scmp.ne.s32.totalorder %s517_s10, %s513_s9 }
   0xa   : > { %s687_s17 = smov (%p39_p0, %s37_s17), 0  ;;  %p88_p5 = scmp.eq.s32.totalorder %s343_s15, 0 }
   0xb   : > { %p592_p4 = por %p82_p2, %p81_p1  ;;  %s67_s20 = ssub.s32 %s529_s13, %s687_s17 }
   0xc   : > { %p115_p6 = scmp.eq.s32.totalorder %s343_s15, 1  ;;  %p72_p7 = scmp.eq.s32.totalorder %s67_s20, 0 }
   0xd   : > { %p598_p8 = por %p88_p5, %p87_p3  ;;  %p121_p10 = scmp.eq.s32.totalorder %s344_s16, 1 }
   0xe   : > { %p602_p9 = por %p115_p6, %p81_p1  ;;  %p347_p12 = scmp.ge.s32.totalorder %s533_s14, 2 }
   0xf   : > { %s607_s23 = scalar_select %p72_p7, %s521_s11, %s74_s18  }
  0x10   : > { %p609_p11 = por %p121_p10, %p87_p3  ;;  %p369_p13 = scmp.lt.s32.totalorder %s533_s14, 2 }
  0x11   : > { %s148_s25 = sand.u32 1, %s521_s11   ;;  %s349_s27 = smul.u32 24, %s529_s13 }
  0x12   : > { %s348_s26 = sshll.u32 %s148_s25, 3  ;;  %p362_p0 = pnand %p369_p13, %p592_p4 }
  0x13   : > { %s152_s28 = scalar_lea.vmem [#allocation2], %s348_s26  ;;  %s272_s4 = scalar_lea.hbm %s675_s1, %s349_s27 }
  0x14   : > { %s164_s29 = sshll.u32 %s152_s28, 4  ;;  %s273_s5 = scalar_lea.hbm %s272_s4, 8  ;;  %s165_s29 = int_to_ptr.vmem [resolvable:$true] %s164_s29 }
  0x15   : > { %s162_s6 = sshll.u32 %s273_s5, 4  ;;  %p350_p1 = scmp.ge.s32.totalorder %s533_s14, 1  ;;  %s163_s6 = int_to_ptr.hbm [resolvable:$true] %s162_s6 }
  0x16   : > { %p169_p2 = scmp.lt.s32.totalorder %s533_s14, 3  ;;  %s149_s7 = scalar_lea.sflag [#allocation3], %s148_s25 }
  0x17   : > { %364 = dma.hbm_to_vmem [thread:$0]  (!%p362_p0), %s163_s6, 128, %s165_s29, %s149_s7  }
  0x18   : > { %p170_p3 = pnand %p350_p1, %p169_p2 }
  0x19   : > { %s625_s8 = sand.u32 (!%p170_p3), 1, %s517_s10  }
  0x1a   : > { %173 = sbr.rel (%p170_p3) target bundleno = 154 (0x9a), region = 28  ;;  %s351_s15 = sshll.u32 (!%p170_p3), %s625_s8, 3 }
  0x1b   : > { %s176_s16 = scalar_lea.sflag (!%p170_p3), [#allocation3], %s625_s8  ;;  %s179_s18 = scalar_lea.vmem (!%p170_p3), [#allocation2], %s351_s15 }
  0x1f   : > { %504 = dma.done.wait (%p598_p8), %s176_s16, 128  }
  0x20   : > { %506 = vsyncadd (%p598_p8), %s176_s16, 4294967168  ;;  %v535_v0 = vmov 0   ;;  %v210_v1 = vld [vmem:[%s674_s0] sm:$0xff]  ;;  %s354_s25 = smul.u32 24, %s525_s12  ;;  %s204_s30 = scalar_lea.vmem [#allocation5], %s351_s15  ;;  %vm217_vm0 = vcmask 130048  }
  0x21   : > { %420 = vset.pattern.permute.xlu0 %v535_v0  ;;  %v209_v2 = vld [vmem:[%s179_s18] sm:$0xff]  ;;  %s236_s21 = sshll.u32 %s204_s30, 4  ;;  %s220_s4 = scalar_lea.sflag [#allocation4], %s625_s8  ;;  %s237_s21 = int_to_ptr.vmem [resolvable:$true] %s236_s21 }
  0x22   : > { %213 = vperm.xlu0 %420, %v210_v1   ;;  %s294_s28 = scalar_lea.hbm %s676_s2, %s354_s25  ;;  %s471_s15 = scalar_lea.hbm %s676_s2, 48 }
  0x23   : > { %s295_s29 = scalar_lea.hbm %s294_s28, 8 }
  0x24   : > { %s238_s3 = sshll.u32 %s295_s29, 4  ;;  %s239_s3 = int_to_ptr.hbm [resolvable:$true] %s238_s3 }
  0x25   : > { %s465_s5 = sshra.s32 %s239_s3, 4  ;;  %s466_s5 = int_to_ptr.hbm [resolvable:$true] %s465_s5 }
  0x26   : > { %s467_s12 = scalar_lea.hbm %s466_s5, 8  ;;  %p472_p7 = scmp.lt.s32.totalorder %s466_s5, %s676_s2 }
  0x27   : > { %p468_p4 = scmp.ne.s32.totalorder %s466_s5, %s467_s12  ;;  %p473_p8 = scmp.lt.s32.totalorder %s471_s15, %s467_s12 }
  0x29   : > { %p469_p5 = pnand %p468_p4, %p602_p9  ;;  %p474_p10 = por %p473_p8, %p472_p7 }
  0x2b   : > { %p470_p6 = pneg %p469_p5 }
  0x2d   : > { %p475_p13 = pnand %p474_p10, %p470_p6 }
  0x94   : > { %v214_v3 = vpop.permute.xlu0 %213 }
  0x95   : > { %v216_v4 = vmul.f32 %v214_v3, %v209_v2 }
  0x97   : > { %218 = vst.msk [vmem:[%s204_s30] sm:$0xff] %vm217_vm0, %v216_v4 }
  0x98   : > { %478 = shalt.err (!%p475_p13)
}
  0x99   : > { %359 = dma.vmem_to_hbm [thread:$0]  (%p602_p9), %s237_s21, 128, %s239_s3, %s220_s4  }
  0x9a PF: > { %s250_s8 = sand.u32 1, %s513_s9   ;;  %p366_p0 = pnand %p347_p12, %p609_p11 }
  0x9b   : > { %s251_s19 = scalar_lea.sflag [#allocation4], %s250_s8 }
  0x9c   : > { %p367_p1 = pneg %p366_p0 }
  0x9e   : > { %508 = dma.done.wait (%p367_p1), %s251_s19, 128  }
  0x9f   : > { %510 = vsyncadd (%p367_p1), %s251_s19, 4294967168  ;;  %s18_s14 = sadd.s32 1, %s533_s14   ;;  %s681_s9 = smov %s517_s10 }
  0xa0   : > { %p15_p2 = scmp.ge.s32.totalorder %s18_s14, 4   ;;  %s682_s10 = smov %s521_s11 }
  0xa1   : > { %s683_s11 = smov %s607_s23  ;;  %s684_s12 = smov %s529_s13 }
  0xa2   : > { %s685_s13 = smov %s687_s17  ;;  %17 = sbr.rel (!%p15_p2) target bundleno = 6 (0x6), region = 76 }
  0xa7   :  { %257 = vsyncpa [#allocation3], 1 }
  0xa8   :  { %259 = vsyncpa [#allocation3 + $0x1], 1 }
  0xa9   :  { %260 = vsyncpa [#allocation4], 1 }
  0xaa   :  { %262 = vsyncpa [#allocation4 + $0x1], 1 }

</bundles_post_ra>
